<compile_context>
chip_gen: v6e
topology: v6e:2x2x1
jax: 0.10.0
libtpu: 0.0.40
codegen_flags: <defaults>
</compile_context>

<pallas_src>
import functools

import jax
import jax.numpy as jnp
from jax.experimental import pallas as pl
from jax.experimental.pallas import tpu as pltpu


NODE_NUMS = [1, 3, 3, 3, 1]  # -> unit shapes: (3,1), (3,3), (3,3), (1,3)

# Static column offsets inside the packed, pre-activated parameter tensor.
_H0, _B0, _A0 = 0, 3, 6        # unit 0: softplus(H) (3), b (3), tanh(a) (3)
_H1, _B1, _A1 = 9, 18, 21      # unit 1: softplus(H) (9, row-major (r,d)), b (3), tanh(a) (3)
_H2, _B2, _A2 = 24, 33, 36     # unit 2: same layout as unit 1
_H3, _B3 = 39, 42              # unit 3: softplus(H) (3), b (1)
_NP = 43                       # packed columns actually used
_NP_PAD = 128                  # lane-aligned packed width (zero padded)


def _factorized_kernel(x_ref, p_ref, o_ref, *, compute_dtype=jnp.float32):
    x = x_ref[...].astype(compute_dtype)          # (C, TN)
    p = p_ref[...].astype(compute_dtype)          # (C, 128) pre-activated params

    def col(c):
        return p[:, c:c + 1]                      # (C, 1), lane-broadcast on use

    # Hoist every parameter column view once.
    h0 = [col(_H0 + r) for r in range(3)]
    b0 = [col(_B0 + r) for r in range(3)]
    a0 = [col(_A0 + r) for r in range(3)]
    h1 = [[col(_H1 + 3 * r + d) for d in range(3)] for r in range(3)]
    b1 = [col(_B1 + r) for r in range(3)]
    a1 = [col(_A1 + r) for r in range(3)]
    h2 = [[col(_H2 + 3 * r + d) for d in range(3)] for r in range(3)]
    b2 = [col(_B2 + r) for r in range(3)]
    a2 = [col(_A2 + r) for r in range(3)]
    h3 = [col(_H3 + d) for d in range(3)]
    b3 = col(_B3)

    # ---- unit 0: d=1, r=3 : y_r = sp(H)_r * x + b_r ; y_r += tanh(a)_r * tanh(y_r)
    ys = []
    for r in range(3):
        y = h0[r] * x + b0[r]
        y = y + a0[r] * jnp.tanh(y)
        ys.append(y)                              # each (C, TN)

    # ---- units 1 & 2: d=3, r=3 (bias fused into the first FMA)
    def mid_unit(hm, bv, av, inp):
        outs = []
        for r in range(3):
            z = hm[r][0] * inp[0] + bv[r]
            z = z + hm[r][1] * inp[1]
            z = z + hm[r][2] * inp[2]
            z = z + av[r] * jnp.tanh(z)
            outs.append(z)
        return outs

    zs = mid_unit(h1, b1, a1, ys)
    zs = mid_unit(h2, b2, a2, zs)

    # ---- unit 3: d=3, r=1, sigmoid output (finalized in f32).
    w = h3[0] * zs[0] + b3
    w = w + h3[1] * zs[1]
    w = w + h3[2] * zs[2]
    w = w.astype(jnp.float32)
    # sigmoid(w) == 0.5 * tanh(0.5 * w) + 0.5  -> single EUP op.
    o_ref[...] = (0.5 * jnp.tanh(0.5 * w) + 0.5).astype(o_ref.dtype)


def init_params(key, num_channel=128):
    """Deterministic init matching FactorizedModelUnit.__init__ shapes (raw params).

    Flat layouts (float32): unit k with (r_k, d_k):
      H -> (C, r_k*d_k) row-major, b -> (C, r_k), a -> (C, r_k) (units 0..2).
    """
    params = {}
    for idx in range(4):
        d_k = NODE_NUMS[idx]
        r_k = NODE_NUMS[idx + 1]
        key, kh, kb = jax.random.split(key, 3)
        H = 0.1 * jax.random.normal(kh, (num_channel, r_k, d_k), jnp.float32)
        b = jax.random.uniform(kb, (num_channel, r_k, 1), jnp.float32, -0.1, 0.1)
        params[f"H{idx}"] = H.reshape(num_channel, r_k * d_k)
        params[f"b{idx}"] = b.reshape(num_channel, r_k)
        if idx < 3:
            params[f"a{idx}"] = jnp.zeros((num_channel, r_k), jnp.float32)
    return params


def _round_up(a, m):
    return (a + m - 1) // m * m


def _device_kind():
    try:
        return jax.devices()[0].device_kind.lower()
    except Exception:
        return ""


def _auto_compute_dtype():
    kind = _device_kind()
    # bf16 EUP/VPU only on v6e / v7x; v5e gets nothing from bf16 compute.
    return jnp.bfloat16 if ("v6" in kind or "v7" in kind) else jnp.float32


def _auto_core_parallel():
    return "v7" in _device_kind()


@functools.partial(
    jax.jit, static_argnames=("block_n", "compute_dtype", "core_semantics"))
def factorized_model_forward(x_nchw, params, *, block_n=4096,
                             compute_dtype=None,
                             core_semantics="auto"):
    B, C, H, W = x_nchw.shape
    N = H * W

    if compute_dtype is None:
        compute_dtype = _auto_compute_dtype()

    # Free reshape (no transpose): (B, C, H, W) -> (B, C, N).
    x = x_nchw.reshape(B, C, N)

    # Pre-activate the tiny (C, k) parameters ONCE per call, pack them and
    # zero-pad to 128 lanes for an aligned, unmasked param DMA.
    cols = [
        jax.nn.softplus(params["H0"]), params["b0"], jnp.tanh(params["a0"]),
        jax.nn.softplus(params["H1"]), params["b1"], jnp.tanh(params["a1"]),
        jax.nn.softplus(params["H2"]), params["b2"], jnp.tanh(params["a2"]),
        jax.nn.softplus(params["H3"]), params["b3"],
    ]
    p = jnp.concatenate(cols, axis=1).astype(jnp.float32)   # (C, 43)
    assert p.shape == (C, _NP)
    p = jnp.pad(p, ((0, 0), (0, _NP_PAD - _NP)))             # (C, 128)

    # Lane-dense tile: multiple of 128, capped by block_n.  No wrapper pad:
    # the ragged last block (if any) is handled by Pallas boundary masking.
    tn = min(block_n, _round_up(N, 128))
    n_blocks = pl.cdiv(N, tn)
    grid = (B, n_blocks)

    use_cp = (core_semantics == "core_parallel"
              or (core_semantics == "auto" and _auto_core_parallel()))
    if use_cp and n_blocks >= 2:
        dim_sem = (pltpu.PARALLEL, pltpu.CORE_PARALLEL)
    elif use_cp and B >= 2:
        dim_sem = (pltpu.CORE_PARALLEL, pltpu.PARALLEL)
    else:
        dim_sem = (pltpu.PARALLEL, pltpu.PARALLEL)

    kernel = functools.partial(_factorized_kernel, compute_dtype=compute_dtype)

    out = pl.pallas_call(
        kernel,
        out_shape=jax.ShapeDtypeStruct((B, C, N), x_nchw.dtype),
        grid_spec=pltpu.PrefetchScalarGridSpec(
            num_scalar_prefetch=0,
            grid=grid,
            in_specs=[
                # x: (B, C, N) gridded as (None, C, tn) -> kernel sees (C, tn)
                pl.BlockSpec((None, C, tn), lambda b, j: (b, 0, j)),
                # packed params: full (C, 128) block, same for every grid step
                pl.BlockSpec((C, _NP_PAD), lambda b, j: (0, 0)),
            ],
            out_specs=pl.BlockSpec((None, C, tn), lambda b, j: (b, 0, j)),
        ),
        compiler_params=pltpu.CompilerParams(
            dimension_semantics=dim_sem,
            # Headroom for large tiles (e.g. C=128, tn=4096 f32 ~ 8 MiB of
            # pipelined buffers) on v5e's 16 MiB default scoped VMEM; well
            # under physical VMEM (incl. 64 MiB/TC on v7x).
            vmem_limit_bytes=32 * 1024 * 1024,
        ),
    )(x, p)

    return out.reshape(B, C, H, W)


def _reference_forward(x_nchw, params):
    """Pure-JAX reference mirroring the PyTorch module (uses raw params)."""
    B, C, H, W = x_nchw.shape
    x = jnp.transpose(x_nchw, (1, 0, 2, 3)).reshape(C, 1, -1)
    for idx in range(4):
        d_k, r_k = NODE_NUMS[idx], NODE_NUMS[idx + 1]
        Hm = jax.nn.softplus(params[f"H{idx}"].reshape(C, r_k, d_k))
        b = params[f"b{idx}"].reshape(C, r_k, 1)
        y = jnp.matmul(Hm, x) + b
        if idx < 3:
            a = jnp.tanh(params[f"a{idx}"].reshape(C, r_k, 1))
            x = y + a * jnp.tanh(y)
        else:
            x = jax.nn.sigmoid(y)
    return jnp.transpose(x.reshape(C, B, H, W), (1, 0, 2, 3))


if __name__ == "__main__":
    key = jax.random.PRNGKey(0)
    k_params, k_x = jax.random.split(key)

    B, C, H, W = 2, 8, 16, 16  # small shapes; C must equal num_channel
    params = init_params(k_params, num_channel=C)
    x = jax.random.normal(k_x, (B, C, H, W), jnp.float32)
    ref = _reference_forward(x, params)

    # 1) Explicit f32 compute path: tight check against the reference.
    out_f32 = jax.block_until_ready(
        factorized_model_forward(x, params, compute_dtype=jnp.float32))
    assert out_f32.shape == (B, C, H, W)
    assert jnp.allclose(out_f32, ref, atol=1e-5, rtol=1e-5)

    # 2) Auto path (bf16 on v6e/v7x, f32 elsewhere): tolerance matches dtype.
    out_auto = jax.block_until_ready(factorized_model_forward(x, params))
    tol = 1e-5 if _auto_compute_dtype() == jnp.float32 else 2e-2
    assert jnp.allclose(out_auto, ref, atol=tol, rtol=tol)

    # 3) Ragged spatial extent (N not a multiple of the tile): exercises the
    #    masked last block (no wrapper pad/slice HBM round trip).
    H2, W2 = 12, 25  # N = 300; block_n=128 -> blocks of (128, 128, 44)
    x2 = jax.random.normal(jax.random.PRNGKey(1), (B, C, H2, W2), jnp.float32)
    out2 = jax.block_until_ready(
        factorized_model_forward(x2, params, block_n=128,
                                 compute_dtype=jnp.float32))
    ref2 = _reference_forward(x2, params)
    assert jnp.allclose(out2, ref2, atol=1e-5, rtol=1e-5)

    print("KERNEL_OK")
</pallas_src>

<mosaic_0001>
module attributes {stable_mosaic.version = 11 : i64} {
  func.func @_factorized_kernel(%arg0: i32, %arg1: i32, %arg2: memref<1x8x256xf32, #tpu.memory_space<vmem>>, %arg3: memref<8x128xf32, #tpu.memory_space<vmem>>, %arg4: memref<1x8x256xf32, #tpu.memory_space<vmem>>) attributes {dimension_semantics = [#tpu.dimension_semantics<parallel>, #tpu.dimension_semantics<parallel>], iteration_bounds = array<i64: 2, 1>, scalar_prefetch = 0 : i64, scratch_operands = 0 : i64, tpu.core_type = #tpu.core_type<tc>, window_params = [{transform_indices = @transform_0, window_bounds = array<i64: 1, 8, 256>}, {pipeline_mode = #tpu.pipeline_mode<synchronous>, transform_indices = @transform_1, window_bounds = array<i64: 8, 128>}, {transform_indices = @transform_2, window_bounds = array<i64: 1, 8, 256>}]} {
    %c0 = arith.constant 0 : index
    %c0_0 = arith.constant 0 : index
    %c0_1 = arith.constant 0 : index
    %0 = vector.load %arg2[%c0, %c0_0, %c0_1] : memref<1x8x256xf32, #tpu.memory_space<vmem>>, vector<1x8x256xf32>
    %1 = vector.shape_cast %0 : vector<1x8x256xf32> to vector<8x256xf32>
    %c0_2 = arith.constant 0 : index
    %c0_3 = arith.constant 0 : index
    %2 = vector.load %arg3[%c0_2, %c0_3] : memref<8x128xf32, #tpu.memory_space<vmem>>, vector<8x128xf32>
    %3 = vector.extract_strided_slice %2 {offsets = [0, 0], sizes = [8, 1], strides = [1, 1]} : vector<8x128xf32> to vector<8x1xf32>
    %4 = vector.extract_strided_slice %2 {offsets = [0, 1], sizes = [8, 1], strides = [1, 1]} : vector<8x128xf32> to vector<8x1xf32>
    %5 = vector.extract_strided_slice %2 {offsets = [0, 2], sizes = [8, 1], strides = [1, 1]} : vector<8x128xf32> to vector<8x1xf32>
    %6 = vector.extract_strided_slice %2 {offsets = [0, 3], sizes = [8, 1], strides = [1, 1]} : vector<8x128xf32> to vector<8x1xf32>
    %7 = vector.extract_strided_slice %2 {offsets = [0, 4], sizes = [8, 1], strides = [1, 1]} : vector<8x128xf32> to vector<8x1xf32>
    %8 = vector.extract_strided_slice %2 {offsets = [0, 5], sizes = [8, 1], strides = [1, 1]} : vector<8x128xf32> to vector<8x1xf32>
    %9 = vector.extract_strided_slice %2 {offsets = [0, 6], sizes = [8, 1], strides = [1, 1]} : vector<8x128xf32> to vector<8x1xf32>
    %10 = vector.extract_strided_slice %2 {offsets = [0, 7], sizes = [8, 1], strides = [1, 1]} : vector<8x128xf32> to vector<8x1xf32>
    %11 = vector.extract_strided_slice %2 {offsets = [0, 8], sizes = [8, 1], strides = [1, 1]} : vector<8x128xf32> to vector<8x1xf32>
    %12 = vector.extract_strided_slice %2 {offsets = [0, 9], sizes = [8, 1], strides = [1, 1]} : vector<8x128xf32> to vector<8x1xf32>
    %13 = vector.extract_strided_slice %2 {offsets = [0, 10], sizes = [8, 1], strides = [1, 1]} : vector<8x128xf32> to vector<8x1xf32>
    %14 = vector.extract_strided_slice %2 {offsets = [0, 11], sizes = [8, 1], strides = [1, 1]} : vector<8x128xf32> to vector<8x1xf32>
    %15 = vector.extract_strided_slice %2 {offsets = [0, 12], sizes = [8, 1], strides = [1, 1]} : vector<8x128xf32> to vector<8x1xf32>
    %16 = vector.extract_strided_slice %2 {offsets = [0, 13], sizes = [8, 1], strides = [1, 1]} : vector<8x128xf32> to vector<8x1xf32>
    %17 = vector.extract_strided_slice %2 {offsets = [0, 14], sizes = [8, 1], strides = [1, 1]} : vector<8x128xf32> to vector<8x1xf32>
    %18 = vector.extract_strided_slice %2 {offsets = [0, 15], sizes = [8, 1], strides = [1, 1]} : vector<8x128xf32> to vector<8x1xf32>
    %19 = vector.extract_strided_slice %2 {offsets = [0, 16], sizes = [8, 1], strides = [1, 1]} : vector<8x128xf32> to vector<8x1xf32>
    %20 = vector.extract_strided_slice %2 {offsets = [0, 17], sizes = [8, 1], strides = [1, 1]} : vector<8x128xf32> to vector<8x1xf32>
    %21 = vector.extract_strided_slice %2 {offsets = [0, 18], sizes = [8, 1], strides = [1, 1]} : vector<8x128xf32> to vector<8x1xf32>
    %22 = vector.extract_strided_slice %2 {offsets = [0, 19], sizes = [8, 1], strides = [1, 1]} : vector<8x128xf32> to vector<8x1xf32>
    %23 = vector.extract_strided_slice %2 {offsets = [0, 20], sizes = [8, 1], strides = [1, 1]} : vector<8x128xf32> to vector<8x1xf32>
    %24 = vector.extract_strided_slice %2 {offsets = [0, 21], sizes = [8, 1], strides = [1, 1]} : vector<8x128xf32> to vector<8x1xf32>
    %25 = vector.extract_strided_slice %2 {offsets = [0, 22], sizes = [8, 1], strides = [1, 1]} : vector<8x128xf32> to vector<8x1xf32>
    %26 = vector.extract_strided_slice %2 {offsets = [0, 23], sizes = [8, 1], strides = [1, 1]} : vector<8x128xf32> to vector<8x1xf32>
    %27 = vector.extract_strided_slice %2 {offsets = [0, 24], sizes = [8, 1], strides = [1, 1]} : vector<8x128xf32> to vector<8x1xf32>
    %28 = vector.extract_strided_slice %2 {offsets = [0, 25], sizes = [8, 1], strides = [1, 1]} : vector<8x128xf32> to vector<8x1xf32>
    %29 = vector.extract_strided_slice %2 {offsets = [0, 26], sizes = [8, 1], strides = [1, 1]} : vector<8x128xf32> to vector<8x1xf32>
    %30 = vector.extract_strided_slice %2 {offsets = [0, 27], sizes = [8, 1], strides = [1, 1]} : vector<8x128xf32> to vector<8x1xf32>
    %31 = vector.extract_strided_slice %2 {offsets = [0, 28], sizes = [8, 1], strides = [1, 1]} : vector<8x128xf32> to vector<8x1xf32>
    %32 = vector.extract_strided_slice %2 {offsets = [0, 29], sizes = [8, 1], strides = [1, 1]} : vector<8x128xf32> to vector<8x1xf32>
    %33 = vector.extract_strided_slice %2 {offsets = [0, 30], sizes = [8, 1], strides = [1, 1]} : vector<8x128xf32> to vector<8x1xf32>
    %34 = vector.extract_strided_slice %2 {offsets = [0, 31], sizes = [8, 1], strides = [1, 1]} : vector<8x128xf32> to vector<8x1xf32>
    %35 = vector.extract_strided_slice %2 {offsets = [0, 32], sizes = [8, 1], strides = [1, 1]} : vector<8x128xf32> to vector<8x1xf32>
    %36 = vector.extract_strided_slice %2 {offsets = [0, 33], sizes = [8, 1], strides = [1, 1]} : vector<8x128xf32> to vector<8x1xf32>
    %37 = vector.extract_strided_slice %2 {offsets = [0, 34], sizes = [8, 1], strides = [1, 1]} : vector<8x128xf32> to vector<8x1xf32>
    %38 = vector.extract_strided_slice %2 {offsets = [0, 35], sizes = [8, 1], strides = [1, 1]} : vector<8x128xf32> to vector<8x1xf32>
    %39 = vector.extract_strided_slice %2 {offsets = [0, 36], sizes = [8, 1], strides = [1, 1]} : vector<8x128xf32> to vector<8x1xf32>
    %40 = vector.extract_strided_slice %2 {offsets = [0, 37], sizes = [8, 1], strides = [1, 1]} : vector<8x128xf32> to vector<8x1xf32>
    %41 = vector.extract_strided_slice %2 {offsets = [0, 38], sizes = [8, 1], strides = [1, 1]} : vector<8x128xf32> to vector<8x1xf32>
    %42 = vector.extract_strided_slice %2 {offsets = [0, 39], sizes = [8, 1], strides = [1, 1]} : vector<8x128xf32> to vector<8x1xf32>
    %43 = vector.extract_strided_slice %2 {offsets = [0, 40], sizes = [8, 1], strides = [1, 1]} : vector<8x128xf32> to vector<8x1xf32>
    %44 = vector.extract_strided_slice %2 {offsets = [0, 41], sizes = [8, 1], strides = [1, 1]} : vector<8x128xf32> to vector<8x1xf32>
    %45 = vector.extract_strided_slice %2 {offsets = [0, 42], sizes = [8, 1], strides = [1, 1]} : vector<8x128xf32> to vector<8x1xf32>
    %46 = vector.broadcast %3 : vector<8x1xf32> to vector<8x256xf32>
    %47 = arith.mulf %46, %1 : vector<8x256xf32>
    %48 = vector.broadcast %6 : vector<8x1xf32> to vector<8x256xf32>
    %49 = arith.addf %47, %48 : vector<8x256xf32>
    %50 = math.tanh %49 : vector<8x256xf32>
    %51 = vector.broadcast %9 : vector<8x1xf32> to vector<8x256xf32>
    %52 = arith.mulf %51, %50 : vector<8x256xf32>
    %53 = arith.addf %49, %52 : vector<8x256xf32>
    %54 = vector.broadcast %4 : vector<8x1xf32> to vector<8x256xf32>
    %55 = arith.mulf %54, %1 : vector<8x256xf32>
    %56 = vector.broadcast %7 : vector<8x1xf32> to vector<8x256xf32>
    %57 = arith.addf %55, %56 : vector<8x256xf32>
    %58 = math.tanh %57 : vector<8x256xf32>
    %59 = vector.broadcast %10 : vector<8x1xf32> to vector<8x256xf32>
    %60 = arith.mulf %59, %58 : vector<8x256xf32>
    %61 = arith.addf %57, %60 : vector<8x256xf32>
    %62 = vector.broadcast %5 : vector<8x1xf32> to vector<8x256xf32>
    %63 = arith.mulf %62, %1 : vector<8x256xf32>
    %64 = vector.broadcast %8 : vector<8x1xf32> to vector<8x256xf32>
    %65 = arith.addf %63, %64 : vector<8x256xf32>
    %66 = math.tanh %65 : vector<8x256xf32>
    %67 = vector.broadcast %11 : vector<8x1xf32> to vector<8x256xf32>
    %68 = arith.mulf %67, %66 : vector<8x256xf32>
    %69 = arith.addf %65, %68 : vector<8x256xf32>
    %70 = vector.broadcast %12 : vector<8x1xf32> to vector<8x256xf32>
    %71 = arith.mulf %70, %53 : vector<8x256xf32>
    %72 = vector.broadcast %21 : vector<8x1xf32> to vector<8x256xf32>
    %73 = arith.addf %71, %72 : vector<8x256xf32>
    %74 = vector.broadcast %13 : vector<8x1xf32> to vector<8x256xf32>
    %75 = arith.mulf %74, %61 : vector<8x256xf32>
    %76 = arith.addf %73, %75 : vector<8x256xf32>
    %77 = vector.broadcast %14 : vector<8x1xf32> to vector<8x256xf32>
    %78 = arith.mulf %77, %69 : vector<8x256xf32>
    %79 = arith.addf %76, %78 : vector<8x256xf32>
    %80 = math.tanh %79 : vector<8x256xf32>
    %81 = vector.broadcast %24 : vector<8x1xf32> to vector<8x256xf32>
    %82 = arith.mulf %81, %80 : vector<8x256xf32>
    %83 = arith.addf %79, %82 : vector<8x256xf32>
    %84 = vector.broadcast %15 : vector<8x1xf32> to vector<8x256xf32>
    %85 = arith.mulf %84, %53 : vector<8x256xf32>
    %86 = vector.broadcast %22 : vector<8x1xf32> to vector<8x256xf32>
    %87 = arith.addf %85, %86 : vector<8x256xf32>
    %88 = vector.broadcast %16 : vector<8x1xf32> to vector<8x256xf32>
    %89 = arith.mulf %88, %61 : vector<8x256xf32>
    %90 = arith.addf %87, %89 : vector<8x256xf32>
    %91 = vector.broadcast %17 : vector<8x1xf32> to vector<8x256xf32>
    %92 = arith.mulf %91, %69 : vector<8x256xf32>
    %93 = arith.addf %90, %92 : vector<8x256xf32>
    %94 = math.tanh %93 : vector<8x256xf32>
    %95 = vector.broadcast %25 : vector<8x1xf32> to vector<8x256xf32>
    %96 = arith.mulf %95, %94 : vector<8x256xf32>
    %97 = arith.addf %93, %96 : vector<8x256xf32>
    %98 = vector.broadcast %18 : vector<8x1xf32> to vector<8x256xf32>
    %99 = arith.mulf %98, %53 : vector<8x256xf32>
    %100 = vector.broadcast %23 : vector<8x1xf32> to vector<8x256xf32>
    %101 = arith.addf %99, %100 : vector<8x256xf32>
    %102 = vector.broadcast %19 : vector<8x1xf32> to vector<8x256xf32>
    %103 = arith.mulf %102, %61 : vector<8x256xf32>
    %104 = arith.addf %101, %103 : vector<8x256xf32>
    %105 = vector.broadcast %20 : vector<8x1xf32> to vector<8x256xf32>
    %106 = arith.mulf %105, %69 : vector<8x256xf32>
    %107 = arith.addf %104, %106 : vector<8x256xf32>
    %108 = math.tanh %107 : vector<8x256xf32>
    %109 = vector.broadcast %26 : vector<8x1xf32> to vector<8x256xf32>
    %110 = arith.mulf %109, %108 : vector<8x256xf32>
    %111 = arith.addf %107, %110 : vector<8x256xf32>
    %112 = vector.broadcast %27 : vector<8x1xf32> to vector<8x256xf32>
    %113 = arith.mulf %112, %83 : vector<8x256xf32>
    %114 = vector.broadcast %36 : vector<8x1xf32> to vector<8x256xf32>
    %115 = arith.addf %113, %114 : vector<8x256xf32>
    %116 = vector.broadcast %28 : vector<8x1xf32> to vector<8x256xf32>
    %117 = arith.mulf %116, %97 : vector<8x256xf32>
    %118 = arith.addf %115, %117 : vector<8x256xf32>
    %119 = vector.broadcast %29 : vector<8x1xf32> to vector<8x256xf32>
    %120 = arith.mulf %119, %111 : vector<8x256xf32>
    %121 = arith.addf %118, %120 : vector<8x256xf32>
    %122 = math.tanh %121 : vector<8x256xf32>
    %123 = vector.broadcast %39 : vector<8x1xf32> to vector<8x256xf32>
    %124 = arith.mulf %123, %122 : vector<8x256xf32>
    %125 = arith.addf %121, %124 : vector<8x256xf32>
    %126 = vector.broadcast %30 : vector<8x1xf32> to vector<8x256xf32>
    %127 = arith.mulf %126, %83 : vector<8x256xf32>
    %128 = vector.broadcast %37 : vector<8x1xf32> to vector<8x256xf32>
    %129 = arith.addf %127, %128 : vector<8x256xf32>
    %130 = vector.broadcast %31 : vector<8x1xf32> to vector<8x256xf32>
    %131 = arith.mulf %130, %97 : vector<8x256xf32>
    %132 = arith.addf %129, %131 : vector<8x256xf32>
    %133 = vector.broadcast %32 : vector<8x1xf32> to vector<8x256xf32>
    %134 = arith.mulf %133, %111 : vector<8x256xf32>
    %135 = arith.addf %132, %134 : vector<8x256xf32>
    %136 = math.tanh %135 : vector<8x256xf32>
    %137 = vector.broadcast %40 : vector<8x1xf32> to vector<8x256xf32>
    %138 = arith.mulf %137, %136 : vector<8x256xf32>
    %139 = arith.addf %135, %138 : vector<8x256xf32>
    %140 = vector.broadcast %33 : vector<8x1xf32> to vector<8x256xf32>
    %141 = arith.mulf %140, %83 : vector<8x256xf32>
    %142 = vector.broadcast %38 : vector<8x1xf32> to vector<8x256xf32>
    %143 = arith.addf %141, %142 : vector<8x256xf32>
    %144 = vector.broadcast %34 : vector<8x1xf32> to vector<8x256xf32>
    %145 = arith.mulf %144, %97 : vector<8x256xf32>
    %146 = arith.addf %143, %145 : vector<8x256xf32>
    %147 = vector.broadcast %35 : vector<8x1xf32> to vector<8x256xf32>
    %148 = arith.mulf %147, %111 : vector<8x256xf32>
    %149 = arith.addf %146, %148 : vector<8x256xf32>
    %150 = math.tanh %149 : vector<8x256xf32>
    %151 = vector.broadcast %41 : vector<8x1xf32> to vector<8x256xf32>
    %152 = arith.mulf %151, %150 : vector<8x256xf32>
    %153 = arith.addf %149, %152 : vector<8x256xf32>
    %154 = vector.broadcast %42 : vector<8x1xf32> to vector<8x256xf32>
    %155 = arith.mulf %154, %125 : vector<8x256xf32>
    %156 = vector.broadcast %45 : vector<8x1xf32> to vector<8x256xf32>
    %157 = arith.addf %155, %156 : vector<8x256xf32>
    %158 = vector.broadcast %43 : vector<8x1xf32> to vector<8x256xf32>
    %159 = arith.mulf %158, %139 : vector<8x256xf32>
    %160 = arith.addf %157, %159 : vector<8x256xf32>
    %161 = vector.broadcast %44 : vector<8x1xf32> to vector<8x256xf32>
    %162 = arith.mulf %161, %153 : vector<8x256xf32>
    %163 = arith.addf %160, %162 : vector<8x256xf32>
    %cst = arith.constant 5.000000e-01 : f32
    %164 = vector.broadcast %cst : f32 to vector<8x256xf32>
    %165 = arith.mulf %164, %163 : vector<8x256xf32>
    %166 = math.tanh %165 : vector<8x256xf32>
    %cst_4 = arith.constant 5.000000e-01 : f32
    %167 = vector.broadcast %cst_4 : f32 to vector<8x256xf32>
    %168 = arith.mulf %167, %166 : vector<8x256xf32>
    %cst_5 = arith.constant 5.000000e-01 : f32
    %169 = vector.broadcast %cst_5 : f32 to vector<8x256xf32>
    %170 = arith.addf %168, %169 : vector<8x256xf32>
    %c0_6 = arith.constant 0 : index
    %c0_7 = arith.constant 0 : index
    %c0_8 = arith.constant 0 : index
    %171 = vector.load %arg4[%c0_6, %c0_7, %c0_8] : memref<1x8x256xf32, #tpu.memory_space<vmem>>, vector<1x8x256xf32>
    %172 = vector.shape_cast %171 : vector<1x8x256xf32> to vector<8x256xf32>
    %173 = vector.shape_cast %170 : vector<8x256xf32> to vector<1x8x256xf32>
    tpu.vector_store %arg4[%c0_6, %c0_7, %c0_8], %173 {strides = array<i32>} : memref<1x8x256xf32, #tpu.memory_space<vmem>>, vector<1x8x256xf32>,
    return
  }
  func.func @transform_0(%arg0: i32, %arg1: i32) -> (i32, i32, i32) {
    %c0_i32 = arith.constant 0 : i32
    %c0_i32_0 = arith.constant 0 : i32
    return %arg0, %c0_i32, %arg1 : i32, i32, i32
  }
  func.func @transform_1(%arg0: i32, %arg1: i32) -> (i32, i32) {
    %c0_i32 = arith.constant 0 : i32
    %c0_i32_0 = arith.constant 0 : i32
    %c0_i32_1 = arith.constant 0 : i32
    return %c0_i32, %c0_i32_0 : i32, i32
  }
  func.func @transform_2(%arg0: i32, %arg1: i32) -> (i32, i32, i32) {
    %c0_i32 = arith.constant 0 : i32
    %c0_i32_0 = arith.constant 0 : i32
    return %arg0, %c0_i32, %arg1 : i32, i32, i32
  }
}

</mosaic_0001>

<bundles_post_ra>
// kernel: factorized_model_forward.1
= control target key start
LH: loop header
LB: loop body
LE: loop exit
PB: predicated region body
PF: predicated region fallthrough
CT: control target
= control target key end

     0   :  { %s852_s9 = smov 0   ;;  %s854_s10 = smov 0   ;;  %s944_s0 = inlined_call_operand.vmem [shape: f32[2,8,256], index: 0, kind: input, shape index: {}]   ;;  %s945_s1 = inlined_call_operand.vmem [shape: f32[8,128], index: 1, kind: input, shape index: {}]   ;;  %s946_s2 = inlined_call_operand.vmem [shape: f32[2,8,256], index: 2, kind: output, shape index: {}]  }
   0x1   :  { %s856_s11 = smov 0  }
   0x2 LB: > { %s24_s12 = sadd.s32 1, %s788_s10  ;;  %p610_p0 = scmp.ge.s32.totalorder %s792_s11, 1  ;;  %s792_s11 = sphi %s856_s11, %s12_s11   ;;  %s788_s10 = sphi %s854_s10, %s948_s10   ;;  %s784_s9 = sphi %s852_s9, %s947_s9  }
   0x3   : > { %p26_p1 = scmp.ge.s32.totalorder %s24_s12, 2  ;;  %p133_p2 = scmp.lt.s32.totalorder %s792_s11, 3 }
   0x5   : > { %s950_s12 = smov (%p26_p1, %s24_s12), 0  ;;  %p134_p3 = pnand %p610_p0, %p133_p2 }
   0x6   : > { %p164_p4 = scmp.lt.s32.totalorder (!%p134_p3), %s784_s9, 1 }
   0x7   : > { %137 = sbr.rel (%p134_p3) target bundleno = 299 (0x12b), region = 28 }
   0xc   : > { %v875_v0 = vld [vmem:[%s945_s1] sm:$0xff]  ;;  %v794_v1 = vmov 6   ;;  %v795_v2 = vmov 0   ;;  %v796_v3 = vmov 1   ;;  %v797_v4 = vmov 3   ;;  %s952_s9 = smov (!%p164_p4, %s784_s9), 1 }
   0xd   : > { %688 = vset.pattern.permute.xlu1 %v794_v1  ;;  %686 = vset.pattern.permute.xlu0 %v795_v2  ;;  %v798_v5 = vmov 4   ;;  %v799_v6 = vmov 2   ;;  %v800_v7 = vmov 5   ;;  %v801_v8 = vmov 8   ;;  %s617_s15 = sshll.u32 %s952_s9, 4 }
   0xe   : > { %202 = vperm.xlu1 %688, %v875_v0   ;;  %188 = vperm.xlu0 %686, %v875_v0   ;;  %v802_v9 = vmov 7   ;;  %v803_v10 = vmov 10   ;;  %v804_v11 = vmov 9   ;;  %v805_v12 = vmov 19   ;;  %s171_s18 = scalar_lea.vmem %s944_s0, %s617_s15  ;;  %s181_s21 = scalar_lea.vmem %s946_s2, %s617_s15 }
   0xf   : > { %v806_v13 = vmov 18   ;;  %v807_v14 = vmov 14   ;;  %v808_v15 = vmov 12   ;;  %v809_v16 = vmov 17   ;;  %v183_v51 = vld [vmem:[%s171_s18] sm:$0xff]  ;;  %v184_v52 = vld [vmem:[%s171_s18 + $0x8] sm:$0xff] }
  0x10   : > { %v810_v17 = vmov 11   ;;  %v811_v18 = vmov 23   ;;  %v812_v19 = vmov 13   ;;  %v813_v20 = vmov 25  }
  0x11   : > { %v814_v21 = vmov 15   ;;  %v815_v22 = vmov 34   ;;  %v816_v23 = vmov 20   ;;  %v817_v24 = vmov 29  }
  0x12   : > { %689 = vset.pattern.permute.xlu1 %v796_v3  ;;  %687 = vset.pattern.permute.xlu0 %v797_v4  ;;  %v818_v25 = vmov 16   ;;  %v819_v26 = vmov 32   ;;  %v820_v27 = vmov 21   ;;  %v821_v28 = vmov 38  }
  0x13   : > { %210 = vperm.xlu1 %689, %v875_v0   ;;  %194 = vperm.xlu0 %687, %v875_v0   ;;  %v822_v29 = vmov 22   ;;  %v823_v30 = vmov 40   ;;  %v824_v31 = vmov 24   ;;  %v825_v32 = vmov 41  }
  0x14   : > { %v826_v33 = vmov 33   ;;  %v827_v34 = vmov 27   ;;  %v828_v35 = vmov 26   ;;  %v829_v36 = vmov 28  }
  0x15   : > { %v830_v37 = vmov 30   ;;  %v831_v38 = vmov 35   ;;  %v832_v39 = vmov 31   ;;  %v833_v40 = vmov 36  }
  0x16   : > { %v834_v41 = vmov 37   ;;  %v835_v43 = vmov 39   ;;  %v836_v45 = vmov 42  }
  0x17   : > { %690 = vset.pattern.permute.xlu1 %v798_v5  ;;  %691 = vset.pattern.permute.xlu0 %v799_v6 }
  0x18   : > { %216 = vperm.xlu1 %690, %v875_v0   ;;  %232 = vperm.xlu0 %691, %v875_v0  }
  0x1c   : > { %692 = vset.pattern.permute.xlu1 %v800_v7  ;;  %694 = vset.pattern.permute.xlu0 %v801_v8 }
  0x1d   : > { %238 = vperm.xlu1 %692, %v875_v0   ;;  %246 = vperm.xlu0 %694, %v875_v0  }
  0x21   : > { %693 = vset.pattern.permute.xlu1 %v802_v9  ;;  %697 = vset.pattern.permute.xlu0 %v803_v10 }
  0x22   : > { %224 = vperm.xlu1 %693, %v875_v0   ;;  %266 = vperm.xlu0 %697, %v875_v0  }
  0x26   : > { %695 = vset.pattern.permute.xlu1 %v804_v11  ;;  %700 = vset.pattern.permute.xlu0 %v805_v12 }
  0x27   : > { %254 = vperm.xlu1 %695, %v875_v0   ;;  %298 = vperm.xlu0 %700, %v875_v0  }
  0x2b   : > { %696 = vset.pattern.permute.xlu1 %v806_v13  ;;  %703 = vset.pattern.permute.xlu0 %v807_v14 }
  0x2c   : > { %260 = vperm.xlu1 %696, %v875_v0   ;;  %312 = vperm.xlu0 %703, %v875_v0  }
  0x30   : > { %698 = vset.pattern.permute.xlu1 %v808_v15  ;;  %706 = vset.pattern.permute.xlu0 %v809_v16 }
  0x31   : > { %292 = vperm.xlu1 %698, %v875_v0   ;;  %350 = vperm.xlu0 %706, %v875_v0  }
  0x35   : > { %699 = vset.pattern.permute.xlu1 %v810_v17  ;;  %709 = vset.pattern.permute.xlu0 %v811_v18 }
  0x36   : > { %274 = vperm.xlu1 %699, %v875_v0   ;;  %360 = vperm.xlu0 %709, %v875_v0  }
  0x3a   : > { %701 = vset.pattern.permute.xlu1 %v812_v19  ;;  %712 = vset.pattern.permute.xlu0 %v813_v20 }
  0x3b   : > { %304 = vperm.xlu1 %701, %v875_v0   ;;  %380 = vperm.xlu0 %712, %v875_v0  }
  0x3f   : > { %702 = vset.pattern.permute.xlu1 %v814_v21  ;;  %715 = vset.pattern.permute.xlu0 %v815_v22 }
  0x40   : > { %330 = vperm.xlu1 %702, %v875_v0   ;;  %412 = vperm.xlu0 %715, %v875_v0  }
  0x44   : > { %704 = vset.pattern.permute.xlu1 %v816_v23  ;;  %718 = vset.pattern.permute.xlu0 %v817_v24 }
  0x45   : > { %336 = vperm.xlu1 %704, %v875_v0   ;;  %426 = vperm.xlu0 %718, %v875_v0  }
  0x49   : > { %705 = vset.pattern.permute.xlu1 %v818_v25  ;;  %721 = vset.pattern.permute.xlu0 %v819_v26 }
  0x4a   : > { %342 = vperm.xlu1 %705, %v875_v0   ;;  %464 = vperm.xlu0 %721, %v875_v0  }
  0x4e   : > { %707 = vset.pattern.permute.xlu1 %v820_v27  ;;  %724 = vset.pattern.permute.xlu0 %v821_v28 }
  0x4f   : > { %284 = vperm.xlu1 %707, %v875_v0   ;;  %474 = vperm.xlu0 %724, %v875_v0  }
  0x53   : > { %708 = vset.pattern.permute.xlu1 %v822_v29  ;;  %727 = vset.pattern.permute.xlu0 %v823_v30 }
  0x54   : > { %322 = vperm.xlu1 %708, %v875_v0   ;;  %494 = vperm.xlu0 %727, %v875_v0  }
  0x58   : > { %710 = vset.pattern.permute.xlu1 %v824_v31  ;;  %729 = vset.pattern.permute.xlu0 %v825_v32 }
  0x59   : > { %368 = vperm.xlu1 %710, %v875_v0  }
  0x5d   : > { %711 = vset.pattern.permute.xlu1 %v826_v33 }
  0x5e   : > { %374 = vperm.xlu1 %711, %v875_v0  }
  0x62   : > { %713 = vset.pattern.permute.xlu1 %v827_v34 }
  0x63   : > { %406 = vperm.xlu1 %713, %v875_v0  }
  0x67   : > { %714 = vset.pattern.permute.xlu1 %v828_v35 }
  0x68   : > { %388 = vperm.xlu1 %714, %v875_v0  }
  0x6c   : > { %716 = vset.pattern.permute.xlu1 %v829_v36 }
  0x6d   : > { %418 = vperm.xlu1 %716, %v875_v0  }
  0x71   : > { %717 = vset.pattern.permute.xlu1 %v830_v37 }
  0x72   : > { %444 = vperm.xlu1 %717, %v875_v0  }
  0x76   : > { %719 = vset.pattern.permute.xlu1 %v831_v38 }
  0x77   : > { %450 = vperm.xlu1 %719, %v875_v0  }
  0x7b   : > { %720 = vset.pattern.permute.xlu1 %v832_v39 }
  0x7c   : > { %456 = vperm.xlu1 %720, %v875_v0  }
  0x80   : > { %722 = vset.pattern.permute.xlu1 %v833_v40 }
  0x81   : > { %398 = vperm.xlu1 %722, %v875_v0  }
  0x85   : > { %723 = vset.pattern.permute.xlu1 %v834_v41 }
  0x86   : > { %436 = vperm.xlu1 %723, %v875_v0  }
  0x89   : > { %v203_v42 = vpop.permute.xlu1 %202  ;;  %v189_v49 = vpop.permute.xlu0 %188 }
  0x8a   : > { %725 = vset.pattern.permute.xlu1 %v835_v43  ;;  %v191_v54 = vmul.f32 %v189_v49, %v183_v51  ;;  %v192_v56 = vmul.f32 %v189_v49, %v184_v52 }
  0x8b   : > { %482 = vperm.xlu1 %725, %v875_v0  }
  0x8e   : > { %v211_v44 = vpop.permute.xlu1 %210  ;;  %v195_v53 = vpop.permute.xlu0 %194 }
  0x8f   : > { %726 = vset.pattern.permute.xlu1 %v836_v45  ;;  %v213_v58 = vmul.f32 %v211_v44, %v183_v51  ;;  %v197_v59 = vadd.f32 %v195_v53, %v191_v54  ;;  %v214_v60 = vmul.f32 %v211_v44, %v184_v52  ;;  %v198_v61 = vadd.f32 %v195_v53, %v192_v56 }
  0x90   : > { %488 = vperm.xlu1 %726, %v875_v0  }
  0x91   : > { %730 = vtanh.f32 %v197_v59 }
  0x92   : > { %732 = vtanh.f32 %v198_v61 }
  0x93   : > { %v217_v46 = vpop.permute.xlu1 %216  ;;  %v233_v57 = vpop.permute.xlu0 %232 }
  0x94   : > { %728 = vset.pattern.permute.xlu1 %v825_v32  ;;  %v219_v63 = vadd.f32 %v217_v46, %v213_v58  ;;  %v220_v1 = vadd.f32 %v217_v46, %v214_v60  ;;  %v236_v2 = vmul.f32 %v233_v57, %v184_v52 }
  0x95   : > { %502 = vperm.xlu1 %728, %v875_v0   ;;  %v235_v0 = vmul.f32 %v233_v57, %v183_v51 }
  0x96   : > { %734 = vtanh.f32 %v219_v63 }
  0x97   : > { %736 = vtanh.f32 %v220_v1 }
  0x98   : > { %v239_v47 = vpop.permute.xlu1 %238  ;;  %v247_v6 = vpop.permute.xlu0 %246 }
  0x99   : > { %v241_v3 = vadd.f32 %v239_v47, %v235_v0  ;;  %v242_v5 = vadd.f32 %v239_v47, %v236_v2 }
  0x9b   : > { %738 = vtanh.f32 %v241_v3 }
  0x9c   : > { %740 = vtanh.f32 %v242_v5 }
  0x9d   : > { %v225_v48 = vpop.permute.xlu1 %224  ;;  %v267_v10 = vpop.permute.xlu0 %266 }
  0x9e   : > { %v731_v9 = vpop.eup %730 }
  0x9f   : > { %v733_v11 = vpop.eup %732  ;;  %v205_v14 = vmul.f32 %v731_v9, %v203_v42 }
  0xa0   : > { %v206_v15 = vmul.f32 %v733_v11, %v203_v42 }
  0xa1   : > { %v207_v22 = vadd.f32 %v205_v14, %v197_v59 }
  0xa2   : > { %v255_v50 = vpop.permute.xlu1 %254  ;;  %v299_v20 = vpop.permute.xlu0 %298  ;;  %v208_v23 = vadd.f32 %v206_v15, %v198_v61 }
  0xa3   : > { %v735_v12 = vpop.eup %734  ;;  %v257_v29 = vmul.f32 %v255_v50, %v207_v22 }
  0xa4   : > { %v737_v13 = vpop.eup %736  ;;  %v227_v17 = vmul.f32 %v735_v12, %v225_v48  ;;  %v258_v31 = vmul.f32 %v255_v50, %v208_v23 }
  0xa5   : > { %v228_v19 = vmul.f32 %v737_v13, %v225_v48 }
  0xa6   : > { %v229_v25 = vadd.f32 %v227_v17, %v219_v63 }
  0xa7   : > { %v261_v55 = vpop.permute.xlu1 %260  ;;  %v230_v28 = vadd.f32 %v228_v19, %v220_v1  ;;  %v313_v32 = vpop.permute.xlu0 %312 }
  0xa8   : > { %v739_v18 = vpop.eup %738  ;;  %v269_v35 = vmul.f32 %v267_v10, %v229_v25  ;;  %v263_v36 = vadd.f32 %v261_v55, %v257_v29  ;;  %v264_v40 = vadd.f32 %v261_v55, %v258_v31 }
  0xa9   : > { %v741_v21 = vpop.eup %740  ;;  %v249_v24 = vmul.f32 %v739_v18, %v247_v6  ;;  %v270_v39 = vmul.f32 %v267_v10, %v230_v28 }
  0xaa   : > { %v250_v27 = vmul.f32 %v741_v21, %v247_v6  ;;  %v271_v50 = vadd.f32 %v269_v35, %v263_v36 }
  0xab   : > { %v251_v34 = vadd.f32 %v249_v24, %v241_v3  ;;  %v272_v54 = vadd.f32 %v270_v39, %v264_v40 }
  0xac   : > { %v293_v62 = vpop.permute.xlu1 %292  ;;  %v252_v38 = vadd.f32 %v250_v27, %v242_v5  ;;  %v351_v56 = vpop.permute.xlu0 %350 }
  0xad   : > { %v295_v30 = vmul.f32 %v293_v62, %v207_v22  ;;  %v296_v33 = vmul.f32 %v293_v62, %v208_v23  ;;  %v315_v59 = vmul.f32 %v313_v32, %v251_v34  ;;  %v353_v1 = vmul.f32 %v351_v56, %v251_v34 }
  0xae   : > { %v316_v62 = vmul.f32 %v313_v32, %v252_v38  ;;  %v354_v3 = vmul.f32 %v351_v56, %v252_v38 }
  0xaf   : > { %v301_v43 = vadd.f32 %v299_v20, %v295_v30  ;;  %v302_v47 = vadd.f32 %v299_v20, %v296_v33 }
  0xb1   : > { %v275_v4 = vpop.permute.xlu1 %274  ;;  %v361_v9 = vpop.permute.xlu0 %360 }
  0xb2   : > { %v277_v44 = vmul.f32 %v275_v4, %v251_v34  ;;  %v278_v48 = vmul.f32 %v275_v4, %v252_v38 }
  0xb4   : > { %v279_v60 = vadd.f32 %v277_v44, %v271_v50  ;;  %v280_v63 = vadd.f32 %v278_v48, %v272_v54 }
  0xb6   : > { %v305_v7 = vpop.permute.xlu1 %304  ;;  %742 = vtanh.f32 %v279_v60  ;;  %v381_v19 = vpop.permute.xlu0 %380 }
  0xb7   : > { %v307_v37 = vmul.f32 %v305_v7, %v229_v25  ;;  %v308_v41 = vmul.f32 %v305_v7, %v230_v28  ;;  %744 = vtanh.f32 %v280_v63 }
  0xb9   : > { %v309_v52 = vadd.f32 %v307_v37, %v301_v43  ;;  %v310_v57 = vadd.f32 %v308_v41, %v302_v47 }
  0xbb   : > { %v331_v8 = vpop.permute.xlu1 %330  ;;  %v317_v2 = vadd.f32 %v315_v59, %v309_v52  ;;  %v318_v4 = vadd.f32 %v316_v62, %v310_v57  ;;  %v413_v33 = vpop.permute.xlu0 %412 }
  0xbc   : > { %v333_v45 = vmul.f32 %v331_v8, %v207_v22  ;;  %v334_v49 = vmul.f32 %v331_v8, %v208_v23 }
  0xbd   : > { %746 = vtanh.f32 %v317_v2 }
  0xbe   : > { %748 = vtanh.f32 %v318_v4 }
  0xc0   : > { %v337_v16 = vpop.permute.xlu1 %336  ;;  %v427_v50 = vpop.permute.xlu0 %426 }
  0xc1   : > { %v339_v53 = vadd.f32 %v337_v16, %v333_v45  ;;  %v340_v58 = vadd.f32 %v337_v16, %v334_v49 }
  0xc3   : > { %v743_v11 = vpop.eup %742 }
  0xc4   : > { %v745_v12 = vpop.eup %744 }
  0xc5   : > { %v343_v26 = vpop.permute.xlu1 %342  ;;  %v465_v62 = vpop.permute.xlu0 %464 }
  0xc6   : > { %v345_v46 = vmul.f32 %v343_v26, %v229_v25  ;;  %v346_v51 = vmul.f32 %v343_v26, %v230_v28 }
  0xc8   : > { %v347_v55 = vadd.f32 %v345_v46, %v339_v53  ;;  %v348_v0 = vadd.f32 %v346_v51, %v340_v58 }
  0xca   : > { %v285_v42 = vpop.permute.xlu1 %284  ;;  %v355_v5 = vadd.f32 %v353_v1, %v347_v55  ;;  %v356_v6 = vadd.f32 %v354_v3, %v348_v0  ;;  %v747_v13 = vpop.eup %746 }
  0xcb   : > { %v749_v14 = vpop.eup %748  ;;  %v287_v15 = vmul.f32 %v743_v11, %v285_v42  ;;  %v288_v18 = vmul.f32 %v745_v12, %v285_v42 }
  0xcc   : > { %750 = vtanh.f32 %v355_v5 }
  0xcd   : > { %752 = vtanh.f32 %v356_v6  ;;  %v289_v23 = vadd.f32 %v287_v15, %v279_v60  ;;  %v290_v25 = vadd.f32 %v288_v18, %v280_v63  ;;  %v475_v18 = vpop.permute.xlu0 %474 }
  0xcf   : > { %v323_v61 = vpop.permute.xlu1 %322 }
  0xd0   : > { %v325_v21 = vmul.f32 %v747_v13, %v323_v61  ;;  %v326_v22 = vmul.f32 %v749_v14, %v323_v61 }
  0xd2   : > { %v327_v28 = vadd.f32 %v325_v21, %v317_v2  ;;  %v328_v31 = vadd.f32 %v326_v22, %v318_v4 }
  0xd4   : > { %v369_v7 = vpop.permute.xlu1 %368  ;;  %v383_v40 = vmul.f32 %v381_v19, %v327_v28  ;;  %v384_v45 = vmul.f32 %v381_v19, %v328_v31 }
  0xd5   : > { %v371_v29 = vmul.f32 %v369_v7, %v289_v23  ;;  %v372_v32 = vmul.f32 %v369_v7, %v290_v25 }
  0xd9   : > { %v375_v8 = vpop.permute.xlu1 %374  ;;  %v751_v17 = vpop.eup %750 }
  0xda   : > { %v753_v20 = vpop.eup %752  ;;  %v363_v24 = vmul.f32 %v751_v17, %v361_v9  ;;  %v377_v35 = vadd.f32 %v375_v8, %v371_v29  ;;  %v378_v39 = vadd.f32 %v375_v8, %v372_v32  ;;  %v495_v32 = vpop.permute.xlu0 %494 }
  0xdb   : > { %v364_v26 = vmul.f32 %v753_v20, %v361_v9 }
  0xdc   : > { %v365_v34 = vadd.f32 %v363_v24, %v355_v5  ;;  %v385_v47 = vadd.f32 %v383_v40, %v377_v35  ;;  %v386_v51 = vadd.f32 %v384_v45, %v378_v39 }
  0xdd   : > { %v366_v38 = vadd.f32 %v364_v26, %v356_v6 }
  0xde   : > { %v407_v10 = vpop.permute.xlu1 %406  ;;  %v429_v52 = vmul.f32 %v427_v50, %v365_v34  ;;  %v467_v4 = vmul.f32 %v465_v62, %v365_v34 }
  0xdf   : > { %v409_v30 = vmul.f32 %v407_v10, %v289_v23  ;;  %v410_v36 = vmul.f32 %v407_v10, %v290_v25  ;;  %v430_v58 = vmul.f32 %v427_v50, %v366_v38  ;;  %v468_v5 = vmul.f32 %v465_v62, %v366_v38 }
  0xe1   : > { %v415_v41 = vadd.f32 %v413_v33, %v409_v30  ;;  %v416_v48 = vadd.f32 %v413_v33, %v410_v36 }
  0xe3   : > { %v389_v16 = vpop.permute.xlu1 %388 }
  0xe4   : > { %v391_v42 = vmul.f32 %v389_v16, %v365_v34  ;;  %v392_v46 = vmul.f32 %v389_v16, %v366_v38 }
  0xe6   : > { %v393_v53 = vadd.f32 %v391_v42, %v385_v47  ;;  %v394_v56 = vadd.f32 %v392_v46, %v386_v51 }
  0xe8   : > { %v419_v27 = vpop.permute.xlu1 %418  ;;  %754 = vtanh.f32 %v393_v53 }
  0xe9   : > { %v421_v37 = vmul.f32 %v419_v27, %v327_v28  ;;  %v422_v43 = vmul.f32 %v419_v27, %v328_v31  ;;  %756 = vtanh.f32 %v394_v56 }
  0xeb   : > { %v423_v49 = vadd.f32 %v421_v37, %v415_v41  ;;  %v424_v54 = vadd.f32 %v422_v43, %v416_v48 }
  0xed   : > { %v445_v44 = vpop.permute.xlu1 %444  ;;  %v431_v59 = vadd.f32 %v429_v52, %v423_v49  ;;  %v432_v60 = vadd.f32 %v430_v58, %v424_v54 }
  0xee   : > { %v447_v55 = vmul.f32 %v445_v44, %v289_v23  ;;  %v448_v61 = vmul.f32 %v445_v44, %v290_v25 }
  0xef   : > { %758 = vtanh.f32 %v431_v59 }
  0xf0   : > { %760 = vtanh.f32 %v432_v60 }
  0xf2   : > { %v451_v57 = vpop.permute.xlu1 %450 }
  0xf3   : > { %v453_v0 = vadd.f32 %v451_v57, %v447_v55  ;;  %v454_v1 = vadd.f32 %v451_v57, %v448_v61 }
  0xf5   : > { %v755_v12 = vpop.eup %754 }
  0xf6   : > { %v757_v13 = vpop.eup %756 }
  0xf7   : > { %v457_v63 = vpop.permute.xlu1 %456 }
  0xf8   : > { %v459_v2 = vmul.f32 %v457_v63, %v327_v28  ;;  %v460_v3 = vmul.f32 %v457_v63, %v328_v31 }
  0xfa   : > { %v461_v6 = vadd.f32 %v459_v2, %v453_v0  ;;  %v462_v7 = vadd.f32 %v460_v3, %v454_v1 }
  0xfc   : > { %v469_v8 = vadd.f32 %v467_v4, %v461_v6  ;;  %v470_v9 = vadd.f32 %v468_v5, %v462_v7  ;;  %v399_v10 = vpop.permute.xlu1 %398  ;;  %v759_v14 = vpop.eup %758 }
  0xfd   : > { %v401_v15 = vmul.f32 %v755_v12, %v399_v10  ;;  %v402_v16 = vmul.f32 %v757_v13, %v399_v10  ;;  %v761_v17 = vpop.eup %760 }
  0xfe   : > { %762 = vtanh.f32 %v469_v8 }
  0xff   : > { %764 = vtanh.f32 %v470_v9  ;;  %v403_v22 = vadd.f32 %v401_v15, %v393_v53  ;;  %v404_v23 = vadd.f32 %v402_v16, %v394_v56 }
 0x101   : > { %v437_v11 = vpop.permute.xlu1 %436 }
 0x102   : > { %v439_v20 = vmul.f32 %v759_v14, %v437_v11  ;;  %v440_v21 = vmul.f32 %v761_v17, %v437_v11 }
 0x104   : > { %v441_v25 = vadd.f32 %v439_v20, %v431_v59  ;;  %v442_v26 = vadd.f32 %v440_v21, %v432_v60 }
 0x106   : > { %v483_v19 = vpop.permute.xlu1 %482  ;;  %v497_v37 = vmul.f32 %v495_v32, %v441_v25  ;;  %v498_v38 = vmul.f32 %v495_v32, %v442_v26 }
 0x107   : > { %v485_v27 = vmul.f32 %v483_v19, %v403_v22  ;;  %v486_v28 = vmul.f32 %v483_v19, %v404_v23 }
 0x10b   : > { %v763_v24 = vpop.eup %762  ;;  %v489_v29 = vpop.permute.xlu1 %488 }
 0x10c   : > { %v765_v30 = vpop.eup %764  ;;  %v477_v31 = vmul.f32 %v763_v24, %v475_v18  ;;  %v491_v34 = vadd.f32 %v489_v29, %v485_v27  ;;  %v492_v35 = vadd.f32 %v489_v29, %v486_v28 }
 0x10d   : > { %v478_v33 = vmul.f32 %v765_v30, %v475_v18 }
 0x10e   : > { %v479_v36 = vadd.f32 %v477_v31, %v469_v8  ;;  %v499_v41 = vadd.f32 %v497_v37, %v491_v34  ;;  %v500_v42 = vadd.f32 %v498_v38, %v492_v35 }
 0x10f   : > { %v480_v39 = vadd.f32 %v478_v33, %v470_v9 }
 0x110   : > { %v503_v40 = vpop.permute.xlu1 %502 }
 0x111   : > { %v505_v43 = vmul.f32 %v503_v40, %v479_v36  ;;  %v506_v44 = vmul.f32 %v503_v40, %v480_v39 }
 0x113   : > { %v507_v45 = vadd.f32 %v505_v43, %v499_v41  ;;  %v508_v46 = vadd.f32 %v506_v44, %v500_v42 }
 0x115   : > { %v509_v47 = vmul.f32 0.5, %v507_v45  ;;  %v510_v48 = vmul.f32 0.5, %v508_v46 }
 0x117   : > { %766 = vtanh.f32 %v509_v47 }
 0x118   : > { %768 = vtanh.f32 %v510_v48 }
 0x124   : > { %v767_v49 = vpop.eup %766 }
 0x125   : > { %v769_v51 = vpop.eup %768  ;;  %v513_v50 = vmul.f32 0.5, %v767_v49 }
 0x126   : > { %v514_v52 = vmul.f32 0.5, %v769_v51 }
 0x127   : > { %v515_v53 = vadd.f32 0.5, %v513_v50 }
 0x128   : > { %v516_v54 = vadd.f32 0.5, %v514_v52 }
 0x129   : > { %517 = vst [vmem:[%s181_s21] sm:$0xff] %v515_v53 }
 0x12a   : > { %518 = vst [vmem:[%s181_s21 + $0x8] sm:$0xff] %v516_v54 }
 0x12b PF: > { %s12_s11 = sadd.s32 1, %s792_s11   ;;  %s947_s9 = smov %s788_s10 }
 0x12c   : > { %p9_p5 = scmp.ge.s32.totalorder %s12_s11, 4   ;;  %s948_s10 = smov %s950_s12 }
 0x12e   :  { %11 = sbr.rel (!%p9_p5) target bundleno = 2 (0x2), region = 58 }

</bundles_post_ra>
